<compile_context>
chip_gen: v5e
topology: v5e:2x2
jax: 0.10.0
libtpu: 0.0.40
codegen_flags: <defaults>
</compile_context>

<pallas_src>
import functools

import numpy as np
import jax
import jax.numpy as jnp
from jax import lax
from jax.experimental import pallas as pl
from jax.experimental.pallas import tpu as pltpu


def _round_up(x, m):
    return (x + m - 1) // m * m


def _pick_bn(n, h_out, m_target=256):
    """Images per grid step.

    Fill the MXU M dimension (~256 rows for v6e/v7x, >=128 for v5e) when N
    allows; only keep >= 2 grid steps (v7x: one per TensorCore) if doing so
    still leaves at least one full 128-row MXU tile per step.
    """
    bn = max(1, min(n, max(1, m_target // max(h_out, 1))))
    while n % bn:
        bn -= 1
    if n // bn < 2:
        half = bn // 2
        while half > 0 and n % half:
            half -= 1
        if half > 0 and half * h_out >= 128:
            bn = half
    return bn


def _conv_bn_kernel(x_ref, w_ref, s_ref, o_ref, a_ref, *,
                    Bn, H_out, KH, dilation, lanes):
    """One grid step = Bn batch elements.

    x_ref : (Bn, H_pad, lanes)        bf16; all conv zero padding pre-baked,
                                      lane-dense (lanes = 128-aligned W_pad*C_in)
    w_ref : (KH*lanes, W_out*C_out)   bf16 block-Toeplitz, BN-scaled weights
    s_ref : (1, W_out*C_out)          f32 folded conv-bias + BN shift
    o_ref : (Bn, H_out, W_out*C_out)  lane-dense output tile
    a_ref : (Bn*H_out, KH*lanes)      bf16 im2row LHS scratch
    """
    # im2row: every scratch element is overwritten (no zero-fill needed); each
    # copy is a full 128-lane-aligned (H_out, 128) tile.
    for b in range(Bn):
        for kh in range(KH):
            src = kh * dilation
            a_ref[b * H_out:(b + 1) * H_out, kh * lanes:(kh + 1) * lanes] = (
                x_ref[b, src:src + H_out, :])

    # Single deep-K bf16 matmul on the MXU, M = Bn*H_out rows, f32 accumulate.
    y = jnp.dot(a_ref[...], w_ref[...], preferred_element_type=jnp.float32)
    y = y + s_ref[...]                        # conv-bias + BN shift (no ReLU)
    o_ref[...] = y.reshape(Bn, H_out, -1).astype(o_ref.dtype)


def conv_bn_relu_forward(x_nchw, weight_oihw, bias, gamma, beta,
                         running_mean, running_var,
                         *, stride=1, padding=1, dilation=1, eps=1e-5):
    """Forward pass of ConvBNReLU. x_nchw: (N, C_in, H, W), weight: (C_out, C_in, KH, KW)."""
    assert stride == 1, "this synthetic kernel supports stride=1 (module default)"
    N, C_in, H, W = x_nchw.shape
    C_out, _, KH, KW = weight_oihw.shape
    H_out = H + 2 * padding - dilation * (KH - 1)
    W_out = W + 2 * padding - dilation * (KW - 1)
    H_pad = H + 2 * padding
    W_pad = W + 2 * padding
    row_len = W_pad * C_in
    lanes = _round_up(row_len, 128)       # 128-lane aligned kh slabs
    K_dim = KH * lanes                    # contraction depth of the matmul
    N_dim = W_out * C_out                 # lane-dense output width (128 here)
    Bn = _pick_bn(N, H_out)
    M_blk = Bn * H_out

    # ---- glue: layout + BN/bias folding (plain JAX, one-time / tiny) ----
    # NCHW -> NHWC -> (N, H, W*C_in); bake ALL conv zero padding (H and W) and
    # the pad-to-128-lanes into the same array; cast to bf16.
    x_rows = jnp.transpose(x_nchw, (0, 2, 3, 1)).reshape(N, H, W * C_in)
    x_rows = jnp.pad(
        x_rows,
        ((0, 0), (padding, padding),
         (padding * C_in, lanes - W * C_in - padding * C_in)))
    x_rows = x_rows.astype(jnp.bfloat16)              # (N, H_pad, lanes)

    # Fold BN into the conv:  (conv(x,W)+b)*scale + shift
    #                       =  conv(x, W*scale) + (b*scale + shift)
    scale = (gamma / jnp.sqrt(running_var + eps)).astype(jnp.float32)
    shift = (beta - running_mean * scale + bias * scale).astype(jnp.float32)
    w_hwio = jnp.transpose(weight_oihw, (2, 3, 1, 0)).astype(jnp.float32) * scale

    # Block-Toeplitz expansion, rows ordered (kh, w_p, c_in) and padded to
    # `lanes` per kh slab so they line up with the scratch lane layout:
    #   B[kh, w_p, c_in, w_out, c_out] = W'[kh, kw, c_in, c_out]
    #   where w_p = w_out + kw*dilation (zero elsewhere).
    sel = np.zeros((KW, W_pad, W_out), np.float32)
    for kw in range(KW):
        for wo in range(W_out):
            sel[kw, wo + kw * dilation, wo] = 1.0
    w_toep = jnp.einsum("hwio,wpq->hpiqo", w_hwio, jnp.asarray(sel))
    w_toep = w_toep.reshape(KH, W_pad * C_in, N_dim)
    w_toep = jnp.pad(w_toep, ((0, 0), (0, lanes - W_pad * C_in), (0, 0)))
    w_toep = w_toep.reshape(K_dim, N_dim).astype(jnp.bfloat16)

    shift_row = jnp.tile(shift, W_out).reshape(1, N_dim)

    kernel = functools.partial(
        _conv_bn_kernel, Bn=Bn, H_out=H_out, KH=KH, dilation=dilation,
        lanes=lanes)

    out_packed = pl.pallas_call(
        kernel,
        out_shape=jax.ShapeDtypeStruct((N, H_out, N_dim), x_nchw.dtype),
        grid_spec=pltpu.PrefetchScalarGridSpec(
            num_scalar_prefetch=0,
            grid=(N // Bn,),
            in_specs=[
                pl.BlockSpec((Bn, H_pad, lanes), lambda n: (n, 0, 0)),
                pl.BlockSpec((K_dim, N_dim), lambda n: (0, 0)),
                pl.BlockSpec((1, N_dim), lambda n: (0, 0)),
            ],
            out_specs=pl.BlockSpec((Bn, H_out, N_dim), lambda n: (n, 0, 0)),
            scratch_shapes=[pltpu.VMEM((M_blk, K_dim), jnp.bfloat16)],
        ),
        compiler_params=pltpu.CompilerParams(
            dimension_semantics=("parallel",),
            vmem_limit_bytes=32 * 1024 * 1024),
    )(x_rows, w_toep, shift_row)

    out_nhwc = out_packed.reshape(N, H_out, W_out, C_out)   # free reshape
    return jnp.transpose(out_nhwc, (0, 3, 1, 2))             # NHWC -> NCHW


def _reference(x_nchw, weight_oihw, bias, gamma, beta, mean, var,
               *, padding=1, dilation=1, eps=1e-5, operand_dtype=jnp.float32):
    """Conv+BN (inference) reference. operand_dtype=bfloat16 mirrors the
    kernel's bf16-operand / f32-accumulate math exactly."""
    scale = gamma / jnp.sqrt(var + eps)
    w_scaled = weight_oihw * scale.reshape(-1, 1, 1, 1)
    x_q = x_nchw.astype(operand_dtype).astype(jnp.float32)
    w_q = w_scaled.astype(operand_dtype).astype(jnp.float32)
    y = lax.conv_general_dilated(
        x_q, w_q, window_strides=(1, 1),
        padding=((padding, padding), (padding, padding)),
        rhs_dilation=(dilation, dilation),
        dimension_numbers=("NCHW", "OIHW", "NCHW"),
        precision=lax.Precision.HIGHEST)
    shift = beta - mean * scale + bias * scale
    return y + shift.reshape(1, -1, 1, 1)


if __name__ == "__main__":
    # Module config: in_chan=4, out_chan=8, ks=3, stride=1, padding=1, dilation=1
    N, C_in, H, W = 2, 4, 16, 16
    C_out, KS = 8, 3

    key = jax.random.PRNGKey(0)
    kx, kw = jax.random.split(key)

    x = jax.random.normal(kx, (N, C_in, H, W), dtype=jnp.float32)

    # Deterministic parameter init mirroring init_weight():
    #   kaiming_normal_(a=1) -> gain = sqrt(2/(1+1)) = 1, std = 1/sqrt(fan_in)
    fan_in = C_in * KS * KS
    weight = jax.random.normal(kw, (C_out, C_in, KS, KS), dtype=jnp.float32) / jnp.sqrt(
        jnp.float32(fan_in))
    bias = jnp.zeros((C_out,), dtype=jnp.float32)            # constant_(bias, 0)
    gamma = jnp.ones((C_out,), dtype=jnp.float32)            # BN default init
    beta = jnp.zeros((C_out,), dtype=jnp.float32)
    running_mean = jnp.zeros((C_out,), dtype=jnp.float32)
    running_var = jnp.ones((C_out,), dtype=jnp.float32)

    out = conv_bn_relu_forward(x, weight, bias, gamma, beta,
                               running_mean, running_var,
                               stride=1, padding=1, dilation=1)
    out = jax.block_until_ready(out)
    assert out.shape == (N, C_out, H, W), out.shape

    # Structural check: identical math to the kernel (bf16 operands, f32 acc).
    ref_bf16 = _reference(x, weight, bias, gamma, beta, running_mean,
                          running_var, padding=1, dilation=1,
                          operand_dtype=jnp.bfloat16)
    assert jnp.allclose(out, ref_bf16, atol=1e-3, rtol=1e-3), \
        float(jnp.max(jnp.abs(out - ref_bf16)))

    # Semantic check vs. full-f32 module math (tolerance covers bf16 operands).
    ref_f32 = _reference(x, weight, bias, gamma, beta, running_mean,
                         running_var, padding=1, dilation=1,
                         operand_dtype=jnp.float32)
    assert jnp.allclose(out, ref_f32, atol=2e-2, rtol=2e-2), \
        float(jnp.max(jnp.abs(out - ref_f32)))

    print("KERNEL_OK")
</pallas_src>

<mosaic_0001>
module attributes {stable_mosaic.version = 11 : i64} {
  func.func @_conv_bn_kernel(%arg0: i32, %arg1: memref<2x18x128xbf16, #tpu.memory_space<vmem>>, %arg2: memref<384x128xbf16, #tpu.memory_space<vmem>>, %arg3: memref<1x128xf32, #tpu.memory_space<vmem>>, %arg4: memref<2x16x128xf32, #tpu.memory_space<vmem>>, %arg5: memref<32x384xbf16, #tpu.memory_space<vmem>>) attributes {dimension_semantics = [#tpu.dimension_semantics<parallel>], iteration_bounds = array<i64: 1>, scalar_prefetch = 0 : i64, scratch_operands = 1 : i64, tpu.core_type = #tpu.core_type<tc>, window_params = [{transform_indices = @transform_0, window_bounds = array<i64: 2, 18, 128>}, {pipeline_mode = #tpu.pipeline_mode<synchronous>, transform_indices = @transform_1, window_bounds = array<i64: 384, 128>}, {pipeline_mode = #tpu.pipeline_mode<synchronous>, transform_indices = @transform_2, window_bounds = array<i64: 1, 128>}, {transform_indices = @transform_3, window_bounds = array<i64: 2, 16, 128>}]} {
    %c0 = arith.constant 0 : index
    %c0_0 = arith.constant 0 : index
    %c0_1 = arith.constant 0 : index
    %0 = vector.load %arg1[%c0, %c0_0, %c0_1] : memref<2x18x128xbf16, #tpu.memory_space<vmem>>, vector<1x16x128xbf16>
    %1 = vector.shape_cast %0 : vector<1x16x128xbf16> to vector<16x128xbf16>
    %c0_2 = arith.constant 0 : index
    %c0_3 = arith.constant 0 : index
    %2 = vector.load %arg5[%c0_2, %c0_3] : memref<32x384xbf16, #tpu.memory_space<vmem>>, vector<16x128xbf16>
    tpu.vector_store %arg5[%c0_2, %c0_3], %1 {strides = array<i32>} : memref<32x384xbf16, #tpu.memory_space<vmem>>, vector<16x128xbf16>,
    %c0_4 = arith.constant 0 : index
    %c1 = arith.constant 1 : index
    %c0_5 = arith.constant 0 : index
    %3 = vector.load %arg1[%c0_4, %c1, %c0_5] : memref<2x18x128xbf16, #tpu.memory_space<vmem>>, vector<1x16x128xbf16>
    %4 = vector.shape_cast %3 : vector<1x16x128xbf16> to vector<16x128xbf16>
    %c0_6 = arith.constant 0 : index
    %c128 = arith.constant 128 : index
    %5 = vector.load %arg5[%c0_6, %c128] : memref<32x384xbf16, #tpu.memory_space<vmem>>, vector<16x128xbf16>
    tpu.vector_store %arg5[%c0_6, %c128], %4 {strides = array<i32>} : memref<32x384xbf16, #tpu.memory_space<vmem>>, vector<16x128xbf16>,
    %c0_7 = arith.constant 0 : index
    %c2 = arith.constant 2 : index
    %c0_8 = arith.constant 0 : index
    %6 = vector.load %arg1[%c0_7, %c2, %c0_8] : memref<2x18x128xbf16, #tpu.memory_space<vmem>>, vector<1x16x128xbf16>
    %7 = vector.shape_cast %6 : vector<1x16x128xbf16> to vector<16x128xbf16>
    %c0_9 = arith.constant 0 : index
    %c256 = arith.constant 256 : index
    %8 = vector.load %arg5[%c0_9, %c256] : memref<32x384xbf16, #tpu.memory_space<vmem>>, vector<16x128xbf16>
    tpu.vector_store %arg5[%c0_9, %c256], %7 {strides = array<i32>} : memref<32x384xbf16, #tpu.memory_space<vmem>>, vector<16x128xbf16>,
    %c1_10 = arith.constant 1 : index
    %c0_11 = arith.constant 0 : index
    %c0_12 = arith.constant 0 : index
    %9 = vector.load %arg1[%c1_10, %c0_11, %c0_12] : memref<2x18x128xbf16, #tpu.memory_space<vmem>>, vector<1x16x128xbf16>
    %10 = vector.shape_cast %9 : vector<1x16x128xbf16> to vector<16x128xbf16>
    %c16 = arith.constant 16 : index
    %c0_13 = arith.constant 0 : index
    %11 = vector.load %arg5[%c16, %c0_13] : memref<32x384xbf16, #tpu.memory_space<vmem>>, vector<16x128xbf16>
    tpu.vector_store %arg5[%c16, %c0_13], %10 {strides = array<i32>} : memref<32x384xbf16, #tpu.memory_space<vmem>>, vector<16x128xbf16>,
    %c1_14 = arith.constant 1 : index
    %c1_15 = arith.constant 1 : index
    %c0_16 = arith.constant 0 : index
    %12 = vector.load %arg1[%c1_14, %c1_15, %c0_16] : memref<2x18x128xbf16, #tpu.memory_space<vmem>>, vector<1x16x128xbf16>
    %13 = vector.shape_cast %12 : vector<1x16x128xbf16> to vector<16x128xbf16>
    %c16_17 = arith.constant 16 : index
    %c128_18 = arith.constant 128 : index
    %14 = vector.load %arg5[%c16_17, %c128_18] : memref<32x384xbf16, #tpu.memory_space<vmem>>, vector<16x128xbf16>
    tpu.vector_store %arg5[%c16_17, %c128_18], %13 {strides = array<i32>} : memref<32x384xbf16, #tpu.memory_space<vmem>>, vector<16x128xbf16>,
    %c1_19 = arith.constant 1 : index
    %c2_20 = arith.constant 2 : index
    %c0_21 = arith.constant 0 : index
    %15 = vector.load %arg1[%c1_19, %c2_20, %c0_21] : memref<2x18x128xbf16, #tpu.memory_space<vmem>>, vector<1x16x128xbf16>
    %16 = vector.shape_cast %15 : vector<1x16x128xbf16> to vector<16x128xbf16>
    %c16_22 = arith.constant 16 : index
    %c256_23 = arith.constant 256 : index
    %17 = vector.load %arg5[%c16_22, %c256_23] : memref<32x384xbf16, #tpu.memory_space<vmem>>, vector<16x128xbf16>
    tpu.vector_store %arg5[%c16_22, %c256_23], %16 {strides = array<i32>} : memref<32x384xbf16, #tpu.memory_space<vmem>>, vector<16x128xbf16>,
    %c0_24 = arith.constant 0 : index
    %c0_25 = arith.constant 0 : index
    %18 = vector.load %arg5[%c0_24, %c0_25] : memref<32x384xbf16, #tpu.memory_space<vmem>>, vector<32x384xbf16>
    %c0_26 = arith.constant 0 : index
    %c0_27 = arith.constant 0 : index
    %19 = vector.load %arg2[%c0_26, %c0_27] : memref<384x128xbf16, #tpu.memory_space<vmem>>, vector<384x128xbf16>
    %cst = arith.constant dense<0.000000e+00> : vector<32x128xf32>
    %20 = tpu.matmul %18, %19, %cst {dimension_numbers = #tpu.dot_dimension_numbers<[1], [0], [0], [1], [0, 0, 1, 1], [], []>} : vector<32x384xbf16>, vector<384x128xbf16>, vector<32x128xf32> -> vector<32x128xf32>
    %c0_28 = arith.constant 0 : index
    %c0_29 = arith.constant 0 : index
    %21 = vector.load %arg3[%c0_28, %c0_29] : memref<1x128xf32, #tpu.memory_space<vmem>>, vector<1x128xf32>
    %22 = vector.broadcast %21 : vector<1x128xf32> to vector<32x128xf32>
    %23 = arith.addf %20, %22 : vector<32x128xf32>
    %24 = vector.shape_cast %23 : vector<32x128xf32> to vector<2x16x128xf32>
    %c0_30 = arith.constant 0 : index
    %c0_31 = arith.constant 0 : index
    %c0_32 = arith.constant 0 : index
    %25 = vector.load %arg4[%c0_30, %c0_31, %c0_32] : memref<2x16x128xf32, #tpu.memory_space<vmem>>, vector<2x16x128xf32>
    tpu.vector_store %arg4[%c0_30, %c0_31, %c0_32], %24 {strides = array<i32>} : memref<2x16x128xf32, #tpu.memory_space<vmem>>, vector<2x16x128xf32>,
    return
  }
  func.func @transform_0(%arg0: i32) -> (i32, i32, i32) {
    %c0_i32 = arith.constant 0 : i32
    %c0_i32_0 = arith.constant 0 : i32
    %c0_i32_1 = arith.constant 0 : i32
    return %arg0, %c0_i32, %c0_i32_0 : i32, i32, i32
  }
  func.func @transform_1(%arg0: i32) -> (i32, i32) {
    %c0_i32 = arith.constant 0 : i32
    %c0_i32_0 = arith.constant 0 : i32
    %c0_i32_1 = arith.constant 0 : i32
    return %c0_i32, %c0_i32_0 : i32, i32
  }
  func.func @transform_2(%arg0: i32) -> (i32, i32) {
    %c0_i32 = arith.constant 0 : i32
    %c0_i32_0 = arith.constant 0 : i32
    %c0_i32_1 = arith.constant 0 : i32
    return %c0_i32, %c0_i32_0 : i32, i32
  }
  func.func @transform_3(%arg0: i32) -> (i32, i32, i32) {
    %c0_i32 = arith.constant 0 : i32
    %c0_i32_0 = arith.constant 0 : i32
    %c0_i32_1 = arith.constant 0 : i32
    return %arg0, %c0_i32, %c0_i32_0 : i32, i32, i32
  }
}

</mosaic_0001>

<bundles_post_ra>
// kernel: tpu_custom_call.1
= control target key start
LH: loop header
LB: loop body
LE: loop exit
PB: predicated region body
PF: predicated region fallthrough
CT: control target
= control target key end

     0   :  { %8 = vsyncpa [#allocation4], 0  ;;  %s796_s0 = inlined_call_operand.vmem [shape: bf16[2,18,128], index: 0, kind: input, shape index: {}]   ;;  %s797_s1 = inlined_call_operand.hbm [shape: bf16[384,128], index: 1, kind: input, shape index: {}]   ;;  %s798_s2 = inlined_call_operand.vmem [shape: f32[1,128], index: 2, kind: input, shape index: {}]   ;;  %s799_s3 = inlined_call_operand.hbm [shape: f32[2,16,128], index: 3, kind: output, shape index: {}]  }
   0x1   :  { %9 = vsyncpa [#allocation5], 0  ;;  %s16_s14 = sshll.u32 %s797_s1, 4  ;;  %s685_s15 = smov [#allocation3]   ;;  %s17_s14 = int_to_ptr.hbm [resolvable:$true] %s16_s14 }
   0x2   :  { %s18_s16 = sshll.u32 %s685_s15, 4  ;;  %s686_s17 = smov 64   ;;  %s19_s16 = int_to_ptr.vmem [resolvable:$true] %s18_s16 }
   0x3   :  { %s687_s18 = smov 4  }
   0x4   :  { %24 = dma.hbm_to_vmem [thread:$0]  %s17_s14, 3072, %s19_s16, [#allocation4], %s686_s17, %s686_s17, %s687_s18  }
   0x5   :  { %681 = dma.done.wait [#allocation4], 3072  }
   0x6   :  { %682 = vsyncadd [#allocation4], 4294964224  ;;  %v601_v0 = vld [vmem:[#allocation3 + $0x38] sm:$0xff]  ;;  %v600_v3 = vld [vmem:[#allocation3 + $0x30] sm:$0xff]  ;;  %vm38_vm0 = vsmask.f32 3328 }
   0x7   :  { %v609_v1 = vld [vmem:[#allocation3 + $0x78] sm:$0xff]  ;;  %378 = vmatpush.bf16.msra.mxu0 %v601_v0  ;;  %v608_v4 = vld [vmem:[#allocation3 + $0x70] sm:$0xff]  ;;  %618 = vmatpush.bf16.msra.mxu3 %v601_v0  ;;  %v599_v6 = vld [vmem:[#allocation3 + $0x28] sm:$0xff]  ;;  %vm39_vm1 = vsmask.f32 7440  ;;  %vm75_vm2 = vcmask 1042432  }
   0x8   :  { %v617_v2 = vld [vmem:[#allocation3 + $0xb8] sm:$0xff]  ;;  %397 = vmatpush.bf16.msra.mxu1 %v609_v1  ;;  %v616_v5 = vld [vmem:[#allocation3 + $0xb0] sm:$0xff]  ;;  %v607_v7 = vld [vmem:[#allocation3 + $0x68] sm:$0xff]  ;;  %vm76_vm3 = vcmask 1046532   ;;  %s445_s26 = sshll.u32 %s799_s3, 4  ;;  %s689_s27 = smov 128   ;;  %s446_s26 = int_to_ptr.hbm [resolvable:$true] %s445_s26 }
   0x9   :  { %416 = vmatpush.bf16.msra.mxu2 %v617_v2  ;;  %v615_v8 = vld [vmem:[#allocation3 + $0xa8] sm:$0xff]  ;;  %v598_v9 = vld [vmem:[#allocation3 + $0x20] sm:$0xff]  ;;  %v31_v11 = vld [vmem:[%s796_s0] sm:$0xf]  ;;  %s690_s28 = smov 8  }
   0xa   :  { %v606_v10 = vld [vmem:[#allocation3 + $0x60] sm:$0xff]  ;;  %v32_v12 = vld [vmem:[%s796_s0 + $0x4] sm:$0xf]  ;;  %v35_v13 = vld [vmem:[%s796_s0] sm:$0xf] }
   0xb   :  { %379 = vmatpush.bf16.msra.mxu0 %v600_v3  ;;  %619 = vmatpush.bf16.msra.mxu3 %v600_v3  ;;  %33 = vst [vmem:[#allocation2] sm:$0xf] %v31_v11  ;;  %v36_v14 = vld [vmem:[%s796_s0 + $0x4] sm:$0xf]  ;;  %v37_v15 = vld [vmem:[%s796_s0 + $0x8] sm:$0x1]  ;;  %vm740_vm4 = vmor %vm75_vm2, %vm76_vm3 }
   0xc   :  { %398 = vmatpush.bf16.msra.mxu1 %v608_v4  ;;  %34 = vst [vmem:[#allocation2 + $0xc] sm:$0xf] %v32_v12  ;;  %v42_v16 = vshrl.u32 %v35_v13, 16  ;;  %v45_v17 = vshll.u32 %v35_v13, 16  ;;  %v51_v18 = vshll.u32 %v36_v14, 16  ;;  %v55_v19 = vshrl.u32 %v36_v14, 16  ;;  %vm755_vm5 = vmor %vm38_vm0, %vm39_vm1 }
   0xd   :  { %417 = vmatpush.bf16.msra.mxu2 %v616_v5  ;;  %v614_v20 = vld [vmem:[#allocation3 + $0xa0] sm:$0xff]  ;;  %v61_v21 = vshll.u32 %v37_v15, 16  ;;  %v69_v22 = vld [vmem:[%s796_s0] sm:$0xe]  ;;  %v70_v23 = vld [vmem:[%s796_s0 + $0x4] sm:$0xf] }
   0xe   :  { %v597_v24 = vld [vmem:[#allocation3 + $0x18] sm:$0xff]  ;;  %v44_v26 = vrot.slane %v42_v16, 4  ;;  %v47_v27 = vrot.slane %v45_v17, 5  ;;  %v53_v28 = vrot.slane %v51_v18, 5  ;;  %v57_v29 = vrot.slane %v55_v19, 4  ;;  %v596_v46 = vld [vmem:[#allocation3 + $0x10] sm:$0xff] }
   0xf   :  { %380 = vmatpush.bf16.msra.mxu0 %v599_v6  ;;  %620 = vmatpush.bf16.msra.mxu3 %v599_v6  ;;  %v605_v25 = vld [vmem:[#allocation3 + $0x58] sm:$0xff]  ;;  %v63_v32 = vrot.slane %v61_v21, 5  ;;  %v458_v33 = vrot.slane %v69_v22, 9  ;;  %v80_v34 = vrot.slane %v70_v23, 5  ;;  %v460_v39 = vld [vmem:[%s796_s0 + $0x10] sm:$0xf] }
  0x10   :  { %399 = vmatpush.bf16.msra.mxu1 %v607_v7  ;;  %v71_v30 = vld [vmem:[%s796_s0 + $0x8] sm:$0x1]  ;;  %v459_v36 = vld [vmem:[%s796_s0 + $0xc] sm:$0xf]  ;;  %v48_v37 = vor.u32 %v47_v27, %v44_v26  ;;  %v58_v38 = vor.u32 %v57_v29, %v53_v28  ;;  %93 = vst [vmem:[#allocation2 + $0x24] sm:$0xf] %v460_v39 }
  0x11   :  { %418 = vmatpush.bf16.msra.mxu2 %v615_v8  ;;  %v83_v35 = vrot.slane %v71_v30, 5  ;;  %92 = vst [vmem:[#allocation2 + $0x18] sm:$0xf] %v459_v36  ;;  %v461_v40 = vld [vmem:[%s796_s0 + $0xc] sm:$0xf]  ;;  %v81_v43 = vsel %vm740_vm4, %v458_v33, %v80_v34  ;;  %v82_v44 = vrot.slane %v80_v34, 4 }
  0x12   :  { %v613_v41 = vld [vmem:[#allocation3 + $0x98] sm:$0xff]  ;;  %v98_v45 = vshrl.u32 %v461_v40, 16  ;;  %v49_v47 = vrot.slane %v48_v37, 4  ;;  %v59_v48 = vrot.slane %v58_v38, 4  ;;  %87 = vst [vmem:[#allocation2 + $0x8] sm:$0xf] %v81_v43 }
  0x13   :  { %381 = vmatpush.bf16.msra.mxu0 %v598_v9  ;;  %621 = vmatpush.bf16.msra.mxu3 %v598_v9  ;;  %v462_v49 = vld [vmem:[%s796_s0 + $0x10] sm:$0xf]  ;;  %v604_v50 = vld [vmem:[#allocation3 + $0x50] sm:$0xff]  ;;  %v84_v52 = vsel %vm740_vm4, %v82_v44, %v83_v35  ;;  %v463_v53 = vld [vmem:[%s796_s0 + $0x14] sm:$0x1]  ;;  %v101_v55 = vshll.u32 %v461_v40, 16 }
  0x14   :  { %400 = vmatpush.bf16.msra.mxu1 %v606_v10  ;;  %v612_v51 = vld [vmem:[#allocation3 + $0x90] sm:$0xff]  ;;  %v100_v54 = vrot.slane %v98_v45, 4  ;;  %v54_v56 = vsel %vm755_vm5, %v49_v47, %v53_v28  ;;  %v64_v57 = vsel %vm755_vm5, %v59_v48, %v63_v32  ;;  %88 = vst [vmem:[#allocation2 + $0x14] sm:$0xf] %v84_v52  ;;  %v464_v58 = vld [vmem:[%s796_s0 + $0xc] sm:$0xe] }
  0x15   :  { %419 = vmatpush.bf16.msra.mxu2 %v614_v20  ;;  %v465_v59 = vld [vmem:[%s796_s0 + $0x10] sm:$0xf]  ;;  %67 = vst [vmem:[#allocation2 + $0x4] sm:$0xf] %v54_v56  ;;  %v103_v60 = vrot.slane %v101_v55, 5  ;;  %v107_v61 = vshll.u32 %v462_v49, 16 }
  0x16   :  { %v111_v62 = vshrl.u32 %v462_v49, 16  ;;  %v117_v63 = vshll.u32 %v463_v53, 16  ;;  %68 = vst [vmem:[#allocation2 + $0x10] sm:$0xf] %v64_v57  ;;  %v466_v0 = vld [vmem:[%s796_s0 + $0x14] sm:$0x1] }
  0x17   :  { %382 = vmatpush.bf16.msra.mxu0 %v597_v24  ;;  %622 = vmatpush.bf16.msra.mxu3 %v597_v24  ;;  %v467_v1 = vrot.slane %v464_v58, 9  ;;  %v133_v2 = vrot.slane %v465_v59, 5  ;;  %v104_v3 = vor.u32 %v103_v60, %v100_v54  ;;  %v109_v4 = vrot.slane %v107_v61, 5  ;;  %v595_v6 = vld [vmem:[#allocation3 + $0x8] sm:$0xff]  ;;  %v594_v15 = vld [vmem:[#allocation3] sm:$0xff] }
  0x18   :  { %401 = vmatpush.bf16.msra.mxu1 %v605_v25  ;;  %v113_v5 = vrot.slane %v111_v62, 4  ;;  %v603_v7 = vld [vmem:[#allocation3 + $0x48] sm:$0xff]  ;;  %v136_v10 = vrot.slane %v466_v0, 5  ;;  %v119_v14 = vrot.slane %v117_v63, 5  ;;  %v602_v16 = vld [vmem:[#allocation3 + $0x40] sm:$0xff] }
  0x19   :  { %420 = vmatpush.bf16.msra.mxu2 %v613_v41  ;;  %v134_v8 = vsel %vm740_vm4, %v467_v1, %v133_v2  ;;  %v135_v9 = vrot.slane %v133_v2, 4  ;;  %v611_v11 = vld [vmem:[#allocation3 + $0x88] sm:$0xff]  ;;  %v105_v12 = vrot.slane %v104_v3, 4  ;;  %v470_v17 = vld [vmem:[#allocation2] sm:$0xf]  ;;  %v610_v20 = vld [vmem:[#allocation3 + $0x80] sm:$0xff] }
  0x1a   :  { %v114_v13 = vor.u32 %v113_v5, %v109_v4  ;;  %140 = vst [vmem:[#allocation2 + $0x20] sm:$0xf] %v134_v8  ;;  %v589_v18 = vld [vmem:[#allocation2 + $0x8] sm:$0xf0]  ;;  %v482_v21 = vld [vmem:[#allocation2 + $0x18] sm:$0xf] }
  0x1b   :  { %383 = vmatpush.bf16.msra.mxu0 %v596_v46  ;;  %623 = vmatpush.bf16.msra.mxu3 %v596_v46  ;;  %v137_v19 = vsel %vm740_vm4, %v135_v9, %v136_v10  ;;  %v110_v22 = vsel %vm755_vm5, %v105_v12, %v109_v4  ;;  %v592_v25 = vld [vmem:[#allocation2 + $0x20] sm:$0xf0]  ;;  %v478_v27 = vld [vmem:[#allocation2 + $0x8] sm:$0xf]  ;;  %v590_v28 = vld [vmem:[#allocation2 + $0x10] sm:$0xf0]  ;;  %v471_v30 = vor.u32 %v589_v18, %v470_v17 }
  0x1c   :  { %402 = vmatpush.bf16.msra.mxu1 %v604_v50  ;;  %v115_v23 = vrot.slane %v114_v13, 4  ;;  %141 = vst [vmem:[#allocation2 + $0x2c] sm:$0xf] %v137_v19  ;;  %v588_v24 = vld [vmem:[#allocation2 + $0x4] sm:$0xf]  ;;  %v479_v32 = vor.u32 %v590_v28, %v478_v27  ;;  %v483_v33 = vor.u32 %v592_v25, %v482_v21 }
  0x1d   :  { %421 = vmatpush.bf16.msra.mxu2 %v612_v51  ;;  %123 = vst [vmem:[#allocation2 + $0x1c] sm:$0xf] %v110_v22  ;;  %v472_v26 = vld [vmem:[#allocation2 + $0xc] sm:$0xf0]  ;;  %v632_v40 = vld [vmem:[%s798_s2] ss:$0 sm:$0xff] }
  0x1e   :  { %v120_v29 = vsel %vm755_vm5, %v115_v23, %v119_v14  ;;  %v475_v31 = vor.u32 %v588_v24, %v472_v26  ;;  %s688_s2 = smov [#allocation6]  }
  0x1f   :  { %384 = vmatpush.bf16.msra.mxu0 %v595_v6  ;;  %624 = vmatpush.bf16.msra.mxu3 %v595_v6  ;;  %124 = vst [vmem:[#allocation2 + $0x28] sm:$0xf] %v120_v29  ;;  %s443_s23 = sshll.u32 %s688_s2, 4  ;;  %s444_s23 = int_to_ptr.vmem [resolvable:$true] %s443_s23 }
  0x20   :  { %403 = vmatpush.bf16.msra.mxu1 %v603_v7 }
  0x21   :  { %422 = vmatpush.bf16.msra.mxu2 %v611_v11  ;;  %v490_v36 = vld [vmem:[#allocation2 + $0x20] sm:$0xf] }
  0x23   :  { %385 = vmatpush.bf16.msra.mxu0 %v594_v15  ;;  %625 = vmatpush.bf16.msra.mxu3 %v594_v15  ;;  %v593_v37 = vld [vmem:[#allocation2 + $0x28] sm:$0xf0] }
  0x24   :  { %404 = vmatpush.bf16.msra.mxu1 %v602_v16  ;;  %v591_v34 = vld [vmem:[#allocation2 + $0x1c] sm:$0xf]  ;;  %v491_v39 = vor.u32 %v593_v37, %v490_v36 }
  0x25   :  { %423 = vmatpush.bf16.msra.mxu2 %v610_v20 }
  0x26   :  { %386 = vmatmul.bf16.vlgmr.msra.gmra.mxu0 %v471_v30  ;;  %391 = vmatmul.bf16.vlgmr.msra.gmra.mxu3 %v483_v33  ;;  %v484_v35 = vld [vmem:[#allocation2 + $0x24] sm:$0xf0] }
  0x27   :  { %405 = vmatmul.bf16.vlgmr.msra.gmra.mxu1 %v475_v31  ;;  %v487_v38 = vor.u32 %v591_v34, %v484_v35 }
  0x28   :  { %424 = vmatmul.bf16.vlgmr.msra.gmra.mxu2 %v479_v32 }
  0x37   :  { %410 = vmatmul.bf16.gmra.mxu1 %v487_v38 }
  0x38   :  { %429 = vmatmul.bf16.gmra.mxu2 %v491_v39 }
  0xa3   :  { %v387_v41 = vpop.f32.mrf.mxu0 }
  0xa4   :  { %v406_v42 = vpop.f32.mrf.mxu1  ;;  %v388_v43 = vadd.f32 %v632_v40, %v387_v41 }
  0xa6   :  { %v407_v44 = vadd.f32 %v406_v42, %v388_v43 }
  0xa9   :  { %v392_v51 = vpop.f32.mrf.mxu3 }
  0xaa   :  { %v393_v53 = vadd.f32 %v632_v40, %v392_v51 }
  0xab   :  { %v425_v45 = vpop.f32.mrf.mxu2  ;;  %v389_v47 = vpop.f32.mrf.mxu0 }
  0xac   :  { %v426_v46 = vadd.f32 %v425_v45, %v407_v44  ;;  %v408_v48 = vpop.f32.mrf.mxu1  ;;  %v390_v49 = vadd.f32 %v632_v40, %v389_v47 }
  0xae   :  { %435 = vst [vmem:[#allocation6] sm:$0xff] %v426_v46  ;;  %v409_v50 = vadd.f32 %v408_v48, %v390_v49 }
  0xb1   :  { %v394_v59 = vpop.f32.mrf.mxu3 }
  0xb2   :  { %v395_v61 = vadd.f32 %v632_v40, %v394_v59 }
  0xb3   :  { %v427_v52 = vpop.f32.mrf.mxu2 }
  0xb4   :  { %v428_v54 = vadd.f32 %v427_v52, %v409_v50  ;;  %v411_v55 = vpop.f32.mrf.mxu1 }
  0xb5   :  { %v412_v56 = vadd.f32 %v411_v55, %v393_v53 }
  0xb6   :  { %436 = vst [vmem:[#allocation6 + $0x8] sm:$0xff] %v428_v54 }
  0xbb   :  { %v430_v57 = vpop.f32.mrf.mxu2 }
  0xbc   :  { %v431_v58 = vadd.f32 %v430_v57, %v412_v56  ;;  %v413_v60 = vpop.f32.mrf.mxu1 }
  0xbd   :  { %v414_v62 = vadd.f32 %v413_v60, %v395_v61 }
  0xbe   :  { %437 = vst [vmem:[#allocation6 + $0x10] sm:$0xff] %v431_v58 }
  0xc3   :  { %v432_v63 = vpop.f32.mrf.mxu2 }
  0xc4   :  { %v433_v0 = vadd.f32 %v432_v63, %v414_v62 }
  0xc6   :  { %438 = vst [vmem:[#allocation6 + $0x18] sm:$0xff] %v433_v0 }
  0xc7   :  { %451 = dma.vmem_to_hbm [thread:$0]  %s444_s23, 512, %s446_s26, [#allocation5], %s689_s27, %s689_s27, %s690_s28  }
  0xc8   :  { %683 = dma.done.wait [#allocation5], 512  }
  0xc9   :  { %684 = vsyncadd [#allocation5], 4294966784 }
  0xca   :  { %456 = vsyncpa [#allocation4], 1 }
  0xcb   :  { %457 = vsyncpa [#allocation5], 1 }

</bundles_post_ra>
